<compile_context>
chip_gen: v5e
topology: v5e:2x2
jax: 0.10.0
libtpu: 0.0.40
codegen_flags: <defaults>
</compile_context>

<pallas_src>
import math

import jax
import jax.numpy as jnp
from jax.experimental import pallas as pl
from jax.experimental.pallas import tpu as pltpu


def _affine_kernel(alpha_ref, beta_ref, x_ref, o_ref):
    # alpha_ref, beta_ref: (1, width) ; x_ref, o_ref: (tile_m, width)
    o_ref[...] = (alpha_ref[...] * x_ref[...] + beta_ref[...]).astype(o_ref.dtype)


def _cdiv(a, b):
    return -(-a // b)


def _lane_dense_width(in_dim, lane_target=128):
    """Smallest width that is a multiple of both in_dim and 128 (>= lane_target)."""
    base = (in_dim * 128) // math.gcd(in_dim, 128)      # lcm(in_dim, 128)
    width = base * max(1, lane_target // base)
    return width, width // in_dim


def _vmem_capacity_bytes():
    try:
        cap = getattr(pltpu.get_tpu_info(), "vmem_capacity_bytes", None)
        if cap:
            return int(cap)
    except Exception:
        pass
    return 64 << 20   # conservative (v7x-class per-TC VMEM)


def _plan(M, width, itemsize, tile_budget_bytes):
    """Pick tile_m, buffering depth and a derived vmem limit."""
    row_bytes = width * itemsize
    sub = max(8, 32 // itemsize)                 # packed-sublane granularity
    vmem_cap = _vmem_capacity_bytes()
    v7x_like = vmem_cap < (100 << 20)            # 64 MiB per-TC parts

    if tile_budget_bytes is None:
        tile_budget_bytes = (4 << 20) if v7x_like else (8 << 20)

    def rdown(v):
        return max(sub, (v // sub) * sub)

    tile_m = rdown(min(tile_budget_bytes // max(row_bytes, 1), _cdiv(M, sub) * sub))
    steps = _cdiv(M, tile_m)

    if v7x_like:
        # Prefer an even step count >= 4 (2 TensorCores) but never shrink
        # tiles below ~2 MiB just to manufacture grid steps.
        min_tile_m = rdown(min(tile_m, (2 << 20) // max(row_bytes, 1)))
        while tile_m > min_tile_m and (steps < 4 or steps % 2 != 0):
            nxt = rdown(tile_m // 2)
            if nxt >= tile_m:
                break
            tile_m = nxt
            steps = _cdiv(M, tile_m)

    buffers = 3 if steps >= 4 else 2             # deeper pipelining for long grids
    tile_bytes = tile_m * row_bytes
    live = 2 * buffers * tile_bytes + 4 * row_bytes      # x+out buffers, alpha/beta
    vmem_limit = int(min((3 * vmem_cap) // 4, max(live + (8 << 20), 16 << 20)))
    return dict(tile_m=tile_m, buffers=buffers, vmem_limit=vmem_limit)


def _call_pallas(alpha_w, beta_w, x2d, *, tile_m, buffers, vmem_limit, out_dtype):
    M, width = x2d.shape
    grid = (_cdiv(M, tile_m),)
    xo_kwargs = {"pipeline_mode": pl.Buffered(buffers)} if buffers != 2 else {}
    return pl.pallas_call(
        _affine_kernel,
        out_shape=jax.ShapeDtypeStruct((M, width), out_dtype),
        grid_spec=pltpu.PrefetchScalarGridSpec(
            num_scalar_prefetch=0,
            grid=grid,
            in_specs=[
                pl.BlockSpec((1, width), lambda i: (0, 0)),        # alpha (resident)
                pl.BlockSpec((1, width), lambda i: (0, 0)),        # beta  (resident)
                pl.BlockSpec((tile_m, width), lambda i: (i, 0), **xo_kwargs),
            ],
            out_specs=pl.BlockSpec((tile_m, width), lambda i: (i, 0), **xo_kwargs),
        ),
        compiler_params=pltpu.CompilerParams(
            dimension_semantics=("parallel",),
            vmem_limit_bytes=vmem_limit,
        ),
    )(alpha_w, beta_w, x2d)


def _call_pallas_with_fallback(alpha_w, beta_w, x2d, *, tile_m, buffers,
                               vmem_limit, out_dtype):
    try:
        return _call_pallas(alpha_w, beta_w, x2d, tile_m=tile_m, buffers=buffers,
                            vmem_limit=vmem_limit, out_dtype=out_dtype)
    except Exception:
        if buffers == 2:
            raise
        # Deeper pipelining rejected -> default double-buffering.
        return _call_pallas(alpha_w, beta_w, x2d, tile_m=tile_m, buffers=2,
                            vmem_limit=vmem_limit, out_dtype=out_dtype)


def _affine_apply(feats, alpha_w, beta_w, *, in_dim, width, rows_per_flat,
                  tile_budget_bytes, out_dtype):
    N, d = feats.shape
    assert d == in_dim
    out_dtype = feats.dtype if out_dtype is None else out_dtype
    itemsize = jnp.dtype(feats.dtype).itemsize

    # Pad only up to the reshape granularity (rows_per_flat rows, <=3 for
    # in_dim=32); the ragged last grid block is masked by Pallas, so no
    # tile-granularity padding is needed.
    M = _cdiv(N, rows_per_flat)
    N_flat = M * rows_per_flat
    x = feats if N_flat == N else jnp.pad(feats, ((0, N_flat - N), (0, 0)))
    x = x.reshape(M, width)          # contiguous row-major regroup (free bitcast)

    plan = _plan(M, width, itemsize, tile_budget_bytes)
    out = _call_pallas_with_fallback(alpha_w, beta_w, x, out_dtype=out_dtype, **plan)

    out = out.reshape(N_flat, in_dim)
    return out if N_flat == N else out[:N]


def make_affine_fn(alpha, beta, *, lane_target=128, tile_budget_bytes=None,
                   out_dtype=None):
    """Pre-widens alpha/beta once (hoisted out of the per-call path)."""
    _, in_dim = alpha.shape
    assert alpha.shape == beta.shape == (1, in_dim)
    width, rows_per_flat = _lane_dense_width(in_dim, lane_target)
    alpha_w = jnp.tile(alpha, (1, rows_per_flat)) if rows_per_flat > 1 else alpha
    beta_w = jnp.tile(beta, (1, rows_per_flat)) if rows_per_flat > 1 else beta

    def apply(feats):
        return _affine_apply(feats, alpha_w, beta_w, in_dim=in_dim, width=width,
                             rows_per_flat=rows_per_flat,
                             tile_budget_bytes=tile_budget_bytes,
                             out_dtype=out_dtype)
    return apply


def affine_layer(feats, alpha, beta, *, lane_target=128, tile_budget_bytes=None,
                 out_dtype=None):
    """feats: [N, in_dim]; alpha/beta: [1, in_dim]. Returns alpha*feats+beta."""
    return make_affine_fn(alpha, beta, lane_target=lane_target,
                          tile_budget_bytes=tile_budget_bytes,
                          out_dtype=out_dtype)(feats)


if __name__ == "__main__":
    in_dim = 32

    key = jax.random.PRNGKey(0)
    k_feats, k_alpha, k_beta = jax.random.split(key, 3)

    # Module init is alpha=ones, beta=zeros; perturb deterministically so the
    # affine transform is non-trivial while keeping shapes identical.
    alpha = jnp.ones((1, in_dim), jnp.float32) + 0.1 * jax.random.normal(
        k_alpha, (1, in_dim), dtype=jnp.float32)
    beta = jnp.zeros((1, in_dim), jnp.float32) + 0.1 * jax.random.normal(
        k_beta, (1, in_dim), dtype=jnp.float32)

    apply_affine = make_affine_fn(alpha, beta)   # params widened once (hoisted)

    ok = True
    # Small shapes: aligned (no pad at all) and ragged-N (pad + masked block).
    for n in (64, 50):
        feats = jax.random.normal(k_feats, (n, in_dim), dtype=jnp.float32)
        out = jax.block_until_ready(apply_affine(feats))
        ref = alpha * feats + beta
        ok = ok and out.shape == feats.shape and out.dtype == feats.dtype
        ok = ok and bool(jnp.allclose(out, ref, atol=1e-6, rtol=1e-6))

    # Moderate shape with a tiny tile budget: exercises the multi-step grid,
    # the ragged last block, and the deeper-buffered pipeline path on any
    # TPU generation.
    feats = jax.random.normal(k_feats, (4000, in_dim), dtype=jnp.float32)
    out = jax.block_until_ready(
        affine_layer(feats, alpha, beta, tile_budget_bytes=64 << 10))
    ref = alpha * feats + beta
    ok = ok and out.shape == feats.shape
    ok = ok and bool(jnp.allclose(out, ref, atol=1e-6, rtol=1e-6))

    assert ok, "mismatch vs reference"
    print("KERNEL_OK")
</pallas_src>

<mosaic_0001>
module attributes {stable_mosaic.version = 11 : i64} {
  func.func @_affine_kernel(%arg0: i32, %arg1: memref<1x128xf32, #tpu.memory_space<vmem>>, %arg2: memref<1x128xf32, #tpu.memory_space<vmem>>, %arg3: memref<16x128xf32, #tpu.memory_space<vmem>>, %arg4: memref<16x128xf32, #tpu.memory_space<vmem>>) attributes {dimension_semantics = [#tpu.dimension_semantics<parallel>], iteration_bounds = array<i64: 1>, scalar_prefetch = 0 : i64, scratch_operands = 0 : i64, tpu.core_type = #tpu.core_type<tc>, window_params = [{pipeline_mode = #tpu.pipeline_mode<synchronous>, transform_indices = @transform_0, window_bounds = array<i64: 1, 128>}, {pipeline_mode = #tpu.pipeline_mode<synchronous>, transform_indices = @transform_1, window_bounds = array<i64: 1, 128>}, {transform_indices = @transform_2, window_bounds = array<i64: 16, 128>}, {transform_indices = @transform_3, window_bounds = array<i64: 16, 128>}]} {
    %c0 = arith.constant 0 : index
    %c0_0 = arith.constant 0 : index
    %0 = vector.load %arg1[%c0, %c0_0] : memref<1x128xf32, #tpu.memory_space<vmem>>, vector<1x128xf32>
    %c0_1 = arith.constant 0 : index
    %c0_2 = arith.constant 0 : index
    %1 = vector.load %arg3[%c0_1, %c0_2] : memref<16x128xf32, #tpu.memory_space<vmem>>, vector<16x128xf32>
    %2 = vector.broadcast %0 : vector<1x128xf32> to vector<16x128xf32>
    %3 = arith.mulf %2, %1 : vector<16x128xf32>
    %c0_3 = arith.constant 0 : index
    %c0_4 = arith.constant 0 : index
    %4 = vector.load %arg2[%c0_3, %c0_4] : memref<1x128xf32, #tpu.memory_space<vmem>>, vector<1x128xf32>
    %5 = vector.broadcast %4 : vector<1x128xf32> to vector<16x128xf32>
    %6 = arith.addf %3, %5 : vector<16x128xf32>
    %c0_5 = arith.constant 0 : index
    %c0_6 = arith.constant 0 : index
    %7 = vector.load %arg4[%c0_5, %c0_6] : memref<16x128xf32, #tpu.memory_space<vmem>>, vector<16x128xf32>
    tpu.vector_store %arg4[%c0_5, %c0_6], %6 {strides = array<i32>} : memref<16x128xf32, #tpu.memory_space<vmem>>, vector<16x128xf32>,
    return
  }
  func.func @transform_0(%arg0: i32) -> (i32, i32) {
    %c0_i32 = arith.constant 0 : i32
    %c0_i32_0 = arith.constant 0 : i32
    %c0_i32_1 = arith.constant 0 : i32
    return %c0_i32, %c0_i32_0 : i32, i32
  }
  func.func @transform_1(%arg0: i32) -> (i32, i32) {
    %c0_i32 = arith.constant 0 : i32
    %c0_i32_0 = arith.constant 0 : i32
    %c0_i32_1 = arith.constant 0 : i32
    return %c0_i32, %c0_i32_0 : i32, i32
  }
  func.func @transform_2(%arg0: i32) -> (i32, i32) {
    %c0_i32 = arith.constant 0 : i32
    %c0_i32_0 = arith.constant 0 : i32
    return %arg0, %c0_i32 : i32, i32
  }
  func.func @transform_3(%arg0: i32) -> (i32, i32) {
    %c0_i32 = arith.constant 0 : i32
    %c0_i32_0 = arith.constant 0 : i32
    return %arg0, %c0_i32 : i32, i32
  }
}

</mosaic_0001>

<bundles_post_ra>
// kernel: tpu_custom_call.1
= control target key start
LH: loop header
LB: loop body
LE: loop exit
PB: predicated region body
PF: predicated region fallthrough
CT: control target
= control target key end

     0   :  { %8 = vsyncpa [#allocation3], 0  ;;  %s242_s0 = inlined_call_operand.hbm [shape: f32[1,128], index: 0, kind: input, shape index: {}]   ;;  %s243_s1 = inlined_call_operand.hbm [shape: f32[1,128], index: 1, kind: input, shape index: {}]   ;;  %s244_s2 = inlined_call_operand.hbm [shape: f32[16,128], index: 2, kind: input, shape index: {}]   ;;  %s245_s3 = inlined_call_operand.hbm [shape: f32[16,128], index: 3, kind: output, shape index: {}]  }
   0x1   :  { %9 = vsyncpa [#allocation6], 0  ;;  %s27_s14 = sshll.u32 %s243_s1, 4  ;;  %s28_s14 = int_to_ptr.hbm [resolvable:$true] %s27_s14 }
   0x2   :  { %10 = vsyncpa [#allocation4], 0  ;;  %s204_s15 = smov [#allocation5]   ;;  %s16_s19 = sshll.u32 %s242_s0, 4  ;;  %s17_s19 = int_to_ptr.hbm [resolvable:$true] %s16_s19 }
   0x3   :  { %s29_s16 = sshll.u32 %s204_s15, 4  ;;  %s205_s20 = smov [#allocation2]   ;;  %s30_s16 = int_to_ptr.vmem [resolvable:$true] %s29_s16 }
   0x4   :  { %32 = dma.hbm_to_vmem [thread:$0]  %s28_s14, 16, %s30_s16, [#allocation6]  }
   0x5   :  { %s18_s21 = sshll.u32 %s205_s20, 4  ;;  %s37_s24 = sshll.u32 %s244_s2, 4  ;;  %s19_s21 = int_to_ptr.vmem [resolvable:$true] %s18_s21  ;;  %s38_s24 = int_to_ptr.hbm [resolvable:$true] %s37_s24 }
   0x6   :  { %21 = dma.hbm_to_vmem [thread:$0]  %s17_s19, 16, %s19_s21, [#allocation3]  }
   0x7   :  { %s206_s1 = smov [#allocation7]   ;;  %s207_s26 = smov 128  }
   0x8   :  { %s39_s25 = sshll.u32 %s206_s1, 4  ;;  %s208_s27 = smov 8   ;;  %s40_s25 = int_to_ptr.vmem [resolvable:$true] %s39_s25 }
   0x9   :  { %45 = dma.hbm_to_vmem [thread:$0]  %s38_s24, 256, %s40_s25, [#allocation6], %s207_s26, %s207_s26, %s208_s27  }
   0xa   :  { %198 = dma.done.wait [#allocation3], 16  }
   0xb   :  { %199 = vsyncadd [#allocation3], 4294967280 }
   0xc   :  { %200 = dma.done.wait [#allocation6], 272  }
   0xd   :  { %201 = vsyncadd [#allocation6], 4294967024  ;;  %v59_v0 = vld [vmem:[#allocation7] sm:$0xff]  ;;  %v100_v1 = vld [vmem:[#allocation2] ss:$0 sm:$0xff]  ;;  %s209_s0 = smov [#allocation8]  }
   0xe   :  { %v101_v2 = vld [vmem:[#allocation5] ss:$0 sm:$0xff]  ;;  %v60_v3 = vld [vmem:[#allocation7 + $0x8] sm:$0xff]  ;;  %v64_v4 = vmul.f32 %v100_v1, %v59_v0  ;;  %s78_s2 = sshll.u32 %s209_s0, 4  ;;  %s80_s30 = sshll.u32 %s245_s3, 4  ;;  %s79_s2 = int_to_ptr.vmem [resolvable:$true] %s78_s2  ;;  %s81_s30 = int_to_ptr.hbm [resolvable:$true] %s80_s30 }
   0xf   :  { %v65_v5 = vmul.f32 %v100_v1, %v60_v3 }
  0x10   :  { %v70_v6 = vadd.f32 %v101_v2, %v64_v4 }
  0x11   :  { %v71_v7 = vadd.f32 %v101_v2, %v65_v5 }
  0x12   :  { %72 = vst [vmem:[#allocation8] sm:$0xff] %v70_v6 }
  0x13   :  { %73 = vst [vmem:[#allocation8 + $0x8] sm:$0xff] %v71_v7 }
  0x14   :  { %86 = dma.vmem_to_hbm [thread:$0]  %s79_s2, 256, %s81_s30, [#allocation4], %s207_s26, %s207_s26, %s208_s27  }
  0x15   :  { %202 = dma.done.wait [#allocation4], 256  }
  0x16   :  { %203 = vsyncadd [#allocation4], 4294967040 }
  0x17   :  { %91 = vsyncpa [#allocation3], 1 }
  0x18   :  { %92 = vsyncpa [#allocation6], 1 }
  0x19   :  { %93 = vsyncpa [#allocation4], 1 }

</bundles_post_ra>
